<compile_context>
chip_gen: v7x
topology: tpu7x:2x2x1
jax: 0.10.0
libtpu: 0.0.40
codegen_flags: <defaults>
</compile_context>

<pallas_src>
import functools

import jax
import jax.numpy as jnp
import numpy as np
from jax.experimental import pallas as pl
from jax.experimental.pallas import tpu as pltpu

# Feature cardinalities from torch_geometric.utils.smiles x_map
# (atomic_num, chirality, degree, formal_charge, num_hs,
#  num_radical_electrons, hybridization, is_aromatic, is_in_ring)
FEAT_DIMS = [119, 4, 11, 12, 9, 5, 8, 2, 2]
FEAT_OFFSETS = tuple(int(o) for o in np.cumsum([0] + FEAT_DIMS[:-1]))
TOTAL_ROWS = sum(FEAT_DIMS)
# Pad combined-table rows to a lane multiple so the multi-hot operand is
# lane-dense; padded rows are never indexed.
PADDED_ROWS = ((TOTAL_ROWS + 127) // 128) * 128


def _xavier_uniform(key, shape, dtype=jnp.float32):
    """torch.nn.init.xavier_uniform_ for a 2-D weight (fan_in=shape[1], fan_out=shape[0])."""
    fan_out, fan_in = shape
    bound = float(np.sqrt(6.0 / (fan_in + fan_out)))
    return jax.random.uniform(key, shape, dtype, minval=-bound, maxval=bound)


def _round_up(v, m):
    return (v + m - 1) // m * m


def _atom_encoder_kernel(x_ref, table_ref, out_ref, *, offsets):
    """Embed one tile of TN nodes.

    x_ref     : (TN, F) int32  raw per-column feature indices
    table_ref : (R, D)  f32    concatenated (zero-padded) embedding tables
    out_ref   : (TN, D) f32
    """
    idx = x_ref[...]                        # (TN, F)
    tn, _ = idx.shape
    r = table_ref.shape[0]

    # Multi-hot build.  `offsets` are static Python ints, so the `+ off` folds
    # into the compare.  Accumulate in int32 (cheap bool->int selects + int
    # adds) and cast once at the end -> far less VALU work than per-feature
    # f32 converts/adds.
    row_ids = jax.lax.broadcasted_iota(jnp.int32, (tn, r), 1)
    multi_hot = jnp.zeros((tn, r), jnp.int32)
    for i, off in enumerate(offsets):       # static unroll, F = 9
        multi_hot += (row_ids == idx[:, i:i + 1] + off).astype(jnp.int32)

    # Sum of embeddings == multi_hot @ table (MXU matmul).  Table kept f32 to
    # match the f32 reference; with a bf16 precision budget, cast both
    # operands to bf16 here for the native bf16 MXU path on v6e/v7x.
    out_ref[...] = jnp.dot(
        multi_hot.astype(jnp.float32),
        table_ref[...],
        preferred_element_type=jnp.float32,
    ).astype(out_ref.dtype)


def atom_encoder_pallas(x, table, *, tile_n=256):
    """x: (N, F) int32 raw feature indices; table: (R, D) combined table -> (N, D) f32."""
    n, f = x.shape
    r, d = table.shape

    # Tile sizing: as large as possible (MXU rows, step-overhead amortisation)
    # but capped at ~N/2 so the "parallel" grid axis has >=2 steps when N
    # allows (keeps both v7x TensorCores fed).  VMEM is never the constraint
    # here (< 1 MiB total at tn=256).
    tn = min(tile_n, max(8, _round_up(pl.cdiv(n, 2), 8)))
    n_pad = _round_up(n, tn)
    if n_pad != n:
        # Padded (zero) rows embed to sums of row-0 embeddings; sliced off below.
        x = jnp.pad(x, ((0, n_pad - n), (0, 0)))

    kernel = functools.partial(_atom_encoder_kernel, offsets=FEAT_OFFSETS)

    # TODO(synk): output last dim D (=32) < 128 lanes -> masked stores; a
    # lane-dense (D, N) output layout would help only if downstream consumes
    # it transposed, so the (N, D) module semantics are kept here.
    out = pl.pallas_call(
        kernel,
        out_shape=jax.ShapeDtypeStruct((n_pad, d), jnp.float32),
        grid_spec=pltpu.PrefetchScalarGridSpec(
            num_scalar_prefetch=0,
            grid=(n_pad // tn,),
            in_specs=[
                pl.BlockSpec((tn, f), lambda i: (i, 0)),   # node-feature tile
                pl.BlockSpec((r, d), lambda i: (0, 0)),    # full table, resident
            ],
            out_specs=pl.BlockSpec((tn, d), lambda i: (i, 0)),
        ),
        compiler_params=pltpu.CompilerParams(
            dimension_semantics=("parallel",),
        ),
    )(x.astype(jnp.int32), table)
    return out[:n]


def build_params(emb_dim, key):
    """Deterministically build per-feature embedding tables and the combined table."""
    keys = jax.random.split(key, len(FEAT_DIMS))
    tables = [_xavier_uniform(k, (dim, emb_dim)) for k, dim in zip(keys, FEAT_DIMS)]
    combined = jnp.zeros((PADDED_ROWS, emb_dim), jnp.float32)
    for t, off in zip(tables, FEAT_OFFSETS):
        combined = combined.at[off:off + t.shape[0]].set(t)
    return combined, tables


def reference_forward(x, tables):
    """Pure-JAX reference matching the PyTorch forward."""
    out = 0
    for i, t in enumerate(tables):
        out = out + t[x[:, i]]
    return out


if __name__ == "__main__":
    emb_dim = 32          # hidden
    n_nodes = 37          # deliberately not tile-aligned: exercises padding path
    num_feats = len(FEAT_DIMS)

    key = jax.random.PRNGKey(0)
    k_params, k_x = jax.random.split(key)

    combined_table, tables = build_params(emb_dim, k_params)

    # Random valid feature indices per column.
    cols = []
    xkeys = jax.random.split(k_x, num_feats)
    for i, dim in enumerate(FEAT_DIMS):
        cols.append(jax.random.randint(xkeys[i], (n_nodes, 1), 0, dim, dtype=jnp.int32))
    x = jnp.concatenate(cols, axis=1)       # (N, F) int32

    out = atom_encoder_pallas(x, combined_table, tile_n=256)
    out = jax.block_until_ready(out)

    ref = reference_forward(x, tables)
    np.testing.assert_allclose(np.asarray(out), np.asarray(ref), rtol=1e-5, atol=1e-5)

    print("KERNEL_OK")
</pallas_src>

<mosaic_0001>
module attributes {stable_mosaic.version = 11 : i64} {
  func.func @_atom_encoder_kernel(%arg0: i32, %arg1: memref<24x9xi32, #tpu.memory_space<vmem>>, %arg2: memref<256x32xf32, #tpu.memory_space<vmem>>, %arg3: memref<24x32xf32, #tpu.memory_space<vmem>>) attributes {dimension_semantics = [#tpu.dimension_semantics<parallel>], iteration_bounds = array<i64: 2>, scalar_prefetch = 0 : i64, scratch_operands = 0 : i64, tpu.core_type = #tpu.core_type<tc>, window_params = [{transform_indices = @transform_0, window_bounds = array<i64: 24, 9>}, {pipeline_mode = #tpu.pipeline_mode<synchronous>, transform_indices = @transform_1, window_bounds = array<i64: 256, 32>}, {transform_indices = @transform_2, window_bounds = array<i64: 24, 32>}]} {
    %c0 = arith.constant 0 : index
    %c0_0 = arith.constant 0 : index
    %0 = vector.load %arg1[%c0, %c0_0] : memref<24x9xi32, #tpu.memory_space<vmem>>, vector<24x9xi32>
    %1 = tpu.iota {dimensions = array<i32: 1>} : vector<24x256xi32>
    %c0_i32 = arith.constant 0 : i32
    %2 = vector.broadcast %c0_i32 : i32 to vector<24x256xi32>
    %3 = vector.extract_strided_slice %0 {offsets = [0, 0], sizes = [24, 1], strides = [1, 1]} : vector<24x9xi32> to vector<24x1xi32>
    %c0_i32_1 = arith.constant 0 : i32
    %4 = vector.broadcast %c0_i32_1 : i32 to vector<24x1xi32>
    %5 = arith.addi %3, %4 : vector<24x1xi32>
    %6 = vector.broadcast %5 : vector<24x1xi32> to vector<24x256xi32>
    %7 = arith.cmpi eq, %1, %6 : vector<24x256xi32>
    %8 = arith.extui %7 : vector<24x256xi1> to vector<24x256xi32>
    %9 = arith.addi %2, %8 : vector<24x256xi32>
    %10 = vector.extract_strided_slice %0 {offsets = [0, 1], sizes = [24, 1], strides = [1, 1]} : vector<24x9xi32> to vector<24x1xi32>
    %c119_i32 = arith.constant 119 : i32
    %11 = vector.broadcast %c119_i32 : i32 to vector<24x1xi32>
    %12 = arith.addi %10, %11 : vector<24x1xi32>
    %13 = vector.broadcast %12 : vector<24x1xi32> to vector<24x256xi32>
    %14 = arith.cmpi eq, %1, %13 : vector<24x256xi32>
    %15 = arith.extui %14 : vector<24x256xi1> to vector<24x256xi32>
    %16 = arith.addi %9, %15 : vector<24x256xi32>
    %17 = vector.extract_strided_slice %0 {offsets = [0, 2], sizes = [24, 1], strides = [1, 1]} : vector<24x9xi32> to vector<24x1xi32>
    %c123_i32 = arith.constant 123 : i32
    %18 = vector.broadcast %c123_i32 : i32 to vector<24x1xi32>
    %19 = arith.addi %17, %18 : vector<24x1xi32>
    %20 = vector.broadcast %19 : vector<24x1xi32> to vector<24x256xi32>
    %21 = arith.cmpi eq, %1, %20 : vector<24x256xi32>
    %22 = arith.extui %21 : vector<24x256xi1> to vector<24x256xi32>
    %23 = arith.addi %16, %22 : vector<24x256xi32>
    %24 = vector.extract_strided_slice %0 {offsets = [0, 3], sizes = [24, 1], strides = [1, 1]} : vector<24x9xi32> to vector<24x1xi32>
    %c134_i32 = arith.constant 134 : i32
    %25 = vector.broadcast %c134_i32 : i32 to vector<24x1xi32>
    %26 = arith.addi %24, %25 : vector<24x1xi32>
    %27 = vector.broadcast %26 : vector<24x1xi32> to vector<24x256xi32>
    %28 = arith.cmpi eq, %1, %27 : vector<24x256xi32>
    %29 = arith.extui %28 : vector<24x256xi1> to vector<24x256xi32>
    %30 = arith.addi %23, %29 : vector<24x256xi32>
    %31 = vector.extract_strided_slice %0 {offsets = [0, 4], sizes = [24, 1], strides = [1, 1]} : vector<24x9xi32> to vector<24x1xi32>
    %c146_i32 = arith.constant 146 : i32
    %32 = vector.broadcast %c146_i32 : i32 to vector<24x1xi32>
    %33 = arith.addi %31, %32 : vector<24x1xi32>
    %34 = vector.broadcast %33 : vector<24x1xi32> to vector<24x256xi32>
    %35 = arith.cmpi eq, %1, %34 : vector<24x256xi32>
    %36 = arith.extui %35 : vector<24x256xi1> to vector<24x256xi32>
    %37 = arith.addi %30, %36 : vector<24x256xi32>
    %38 = vector.extract_strided_slice %0 {offsets = [0, 5], sizes = [24, 1], strides = [1, 1]} : vector<24x9xi32> to vector<24x1xi32>
    %c155_i32 = arith.constant 155 : i32
    %39 = vector.broadcast %c155_i32 : i32 to vector<24x1xi32>
    %40 = arith.addi %38, %39 : vector<24x1xi32>
    %41 = vector.broadcast %40 : vector<24x1xi32> to vector<24x256xi32>
    %42 = arith.cmpi eq, %1, %41 : vector<24x256xi32>
    %43 = arith.extui %42 : vector<24x256xi1> to vector<24x256xi32>
    %44 = arith.addi %37, %43 : vector<24x256xi32>
    %45 = vector.extract_strided_slice %0 {offsets = [0, 6], sizes = [24, 1], strides = [1, 1]} : vector<24x9xi32> to vector<24x1xi32>
    %c160_i32 = arith.constant 160 : i32
    %46 = vector.broadcast %c160_i32 : i32 to vector<24x1xi32>
    %47 = arith.addi %45, %46 : vector<24x1xi32>
    %48 = vector.broadcast %47 : vector<24x1xi32> to vector<24x256xi32>
    %49 = arith.cmpi eq, %1, %48 : vector<24x256xi32>
    %50 = arith.extui %49 : vector<24x256xi1> to vector<24x256xi32>
    %51 = arith.addi %44, %50 : vector<24x256xi32>
    %52 = vector.extract_strided_slice %0 {offsets = [0, 7], sizes = [24, 1], strides = [1, 1]} : vector<24x9xi32> to vector<24x1xi32>
    %c168_i32 = arith.constant 168 : i32
    %53 = vector.broadcast %c168_i32 : i32 to vector<24x1xi32>
    %54 = arith.addi %52, %53 : vector<24x1xi32>
    %55 = vector.broadcast %54 : vector<24x1xi32> to vector<24x256xi32>
    %56 = arith.cmpi eq, %1, %55 : vector<24x256xi32>
    %57 = arith.extui %56 : vector<24x256xi1> to vector<24x256xi32>
    %58 = arith.addi %51, %57 : vector<24x256xi32>
    %59 = vector.extract_strided_slice %0 {offsets = [0, 8], sizes = [24, 1], strides = [1, 1]} : vector<24x9xi32> to vector<24x1xi32>
    %c170_i32 = arith.constant 170 : i32
    %60 = vector.broadcast %c170_i32 : i32 to vector<24x1xi32>
    %61 = arith.addi %59, %60 : vector<24x1xi32>
    %62 = vector.broadcast %61 : vector<24x1xi32> to vector<24x256xi32>
    %63 = arith.cmpi eq, %1, %62 : vector<24x256xi32>
    %64 = arith.extui %63 : vector<24x256xi1> to vector<24x256xi32>
    %65 = arith.addi %58, %64 : vector<24x256xi32>
    %66 = arith.sitofp %65 : vector<24x256xi32> to vector<24x256xf32>
    %c0_2 = arith.constant 0 : index
    %c0_3 = arith.constant 0 : index
    %67 = vector.load %arg2[%c0_2, %c0_3] : memref<256x32xf32, #tpu.memory_space<vmem>>, vector<256x32xf32>
    %cst = arith.constant dense<0.000000e+00> : vector<24x32xf32>
    %68 = tpu.matmul %66, %67, %cst {dimension_numbers = #tpu.dot_dimension_numbers<[1], [0], [0], [1], [0, 0, 1, 1], [], []>} : vector<24x256xf32>, vector<256x32xf32>, vector<24x32xf32> -> vector<24x32xf32>
    %c0_4 = arith.constant 0 : index
    %c0_5 = arith.constant 0 : index
    %69 = vector.load %arg3[%c0_4, %c0_5] : memref<24x32xf32, #tpu.memory_space<vmem>>, vector<24x32xf32>
    tpu.vector_store %arg3[%c0_4, %c0_5], %68 {strides = array<i32>} : memref<24x32xf32, #tpu.memory_space<vmem>>, vector<24x32xf32>,
    return
  }
  func.func @transform_0(%arg0: i32) -> (i32, i32) {
    %c0_i32 = arith.constant 0 : i32
    %c0_i32_0 = arith.constant 0 : i32
    return %arg0, %c0_i32 : i32, i32
  }
  func.func @transform_1(%arg0: i32) -> (i32, i32) {
    %c0_i32 = arith.constant 0 : i32
    %c0_i32_0 = arith.constant 0 : i32
    %c0_i32_1 = arith.constant 0 : i32
    return %c0_i32, %c0_i32_0 : i32, i32
  }
  func.func @transform_2(%arg0: i32) -> (i32, i32) {
    %c0_i32 = arith.constant 0 : i32
    %c0_i32_0 = arith.constant 0 : i32
    return %arg0, %c0_i32 : i32, i32
  }
}

</mosaic_0001>

<bundles_post_ra>
// kernel: tpu_custom_call.1
= control target key start
LH: loop header
LB: loop body
LE: loop exit
PB: predicated region body
PF: predicated region fallthrough
CT: control target
= control target key end

     0   :  { %s757_s9 = smov 0   ;;  %s1075_s0 = inlined_call_operand.vmem [shape: s32[48,9], index: 0, kind: input, shape index: {}]   ;;  %s1076_s1 = inlined_call_operand.vmem [shape: f32[256,32], index: 1, kind: input, shape index: {}]   ;;  %s1077_s2 = inlined_call_operand.vmem [shape: f32[48,32], index: 2, kind: output, shape index: {}]  }
   0x1 LB: > { %s592_s10 = sadd.s32 4294967295, %s731_s9   ;;  %p596_p0 = scmp.ge.s32.totalorder %s731_s9, 1  ;;  %s731_s9 = sphi %s757_s9, %s12_s9  }
   0x2   : > { %p113_p1 = scmp.lt.s32.totalorder %s731_s9, 3 }
   0x4   : > { %p114_p2 = pnand %p596_p0, %p113_p1 }
   0x5   : > { %s135_s11 = smul.u32 (!%p114_p2), 3, %s592_s10  ;;  %v733_v0 = vmov (!%p114_p2), 0   ;;  %v734_v5 = vmov (!%p114_p2), 1   ;;  %v735_v8 = vmov (!%p114_p2), 2   ;;  %v436_v11 = vld [vmem:[%s1076_s1 + $0x80] sm:$0xff] (!%p114_p2)  ;;  %v437_v12 = vld [vmem:[%s1076_s1 + $0x88] sm:$0xff] (!%p114_p2) }
   0x6   : > { %117 = sbr.rel (%p114_p2) target bundleno = 441 (0x1b9), region = 28  ;;  %708 = vset.pattern.permute.xlu1 (!%p114_p2), %v733_v0  ;;  %707 = vset.pattern.permute.xlu0 (!%p114_p2), %v733_v0  ;;  %v642_v13 = vpack.c.bf16 (!%p114_p2), %v437_v12, %v436_v11  ;;  %v420_v14 = vld [vmem:[%s1076_s1] sm:$0xff] (!%p114_p2)  ;;  %v421_v15 = vld [vmem:[%s1076_s1 + $0x8] sm:$0xff] (!%p114_p2)  ;;  %v736_v16 = vmov (!%p114_p2), 3   ;;  %v438_v20 = vld [vmem:[%s1076_s1 + $0x90] sm:$0xff] (!%p114_p2)  ;;  %v737_v26 = vmov (!%p114_p2), 4  }
   0x7   : > { %p136_p3 = scmp.lt.s32.totalorder (!%p114_p2), %s135_s11, 5  ;;  %v644_v17 = vpack.c.bf16 (!%p114_p2), %v421_v15, %v420_v14  ;;  %v439_v21 = vld [vmem:[%s1076_s1 + $0x98] sm:$0xff] (!%p114_p2)  ;;  %v422_v23 = vld [vmem:[%s1076_s1 + $0x10] sm:$0xff] (!%p114_p2)  ;;  %v440_v28 = vld [vmem:[%s1076_s1 + $0xa0] sm:$0xff] (!%p114_p2)  ;;  %v738_v35 = vmov (!%p114_p2), 5   ;;  %v739_v46 = vmov (!%p114_p2), 6  }
   0x8   : > { %674 = vmatprep.subr.bf16.mxu1 (!%p114_p2), %v642_v13  ;;  %643 = vmatprep.subr.bf16.mxu0 (!%p114_p2), %v642_v13  ;;  %v646_v22 = vpack.c.bf16 (!%p114_p2), %v439_v21, %v438_v20  ;;  %v423_v24 = vld [vmem:[%s1076_s1 + $0x18] sm:$0xff] (!%p114_p2)  ;;  %v441_v29 = vld [vmem:[%s1076_s1 + $0xa8] sm:$0xff] (!%p114_p2)  ;;  %v424_v32 = vld [vmem:[%s1076_s1 + $0x20] sm:$0xff] (!%p114_p2)  ;;  %v740_v58 = vmov (!%p114_p2), 7  }
   0x9   : > { %682 = vmatpush3.bf16.msra.mxu1 (!%p114_p2), %v644_v17  ;;  %645 = vmatpush3.bf16.msra.mxu0 (!%p114_p2), %v644_v17  ;;  %v648_v25 = vpack.c.bf16 (!%p114_p2), %v423_v24, %v422_v23  ;;  %v650_v31 = vpack.c.bf16 (!%p114_p2), %v441_v29, %v440_v28  ;;  %v425_v33 = vld [vmem:[%s1076_s1 + $0x28] sm:$0xff] (!%p114_p2)  ;;  %v442_v36 = vld [vmem:[%s1076_s1 + $0xb0] sm:$0xff] (!%p114_p2)  ;;  %v443_v37 = vld [vmem:[%s1076_s1 + $0xb8] sm:$0xff] (!%p114_p2)  ;;  %v150_v29 = vlaneseq (!%p114_p2) }
   0xa   : > { %675 = vmatprep.subr.bf16.mxu1 (!%p114_p2), %v646_v22  ;;  %647 = vmatprep.subr.bf16.mxu0 (!%p114_p2), %v646_v22  ;;  %v652_v34 = vpack.c.bf16 (!%p114_p2), %v425_v33, %v424_v32  ;;  %v654_v39 = vpack.c.bf16 (!%p114_p2), %v443_v37, %v442_v36  ;;  %v426_v40 = vld [vmem:[%s1076_s1 + $0x30] sm:$0xff] (!%p114_p2)  ;;  %v427_v41 = vld [vmem:[%s1076_s1 + $0x38] sm:$0xff] (!%p114_p2)  ;;  %v444_v44 = vld [vmem:[%s1076_s1 + $0xc0] sm:$0xff] (!%p114_p2) }
   0xb   : > { %v656_v43 = vpack.c.bf16 (!%p114_p2), %v427_v41, %v426_v40  ;;  %v445_v45 = vld [vmem:[%s1076_s1 + $0xc8] sm:$0xff] (!%p114_p2)  ;;  %v428_v49 = vld [vmem:[%s1076_s1 + $0x40] sm:$0xff] (!%p114_p2)  ;;  %v446_v53 = vld [vmem:[%s1076_s1 + $0xd0] sm:$0xff] (!%p114_p2) }
   0xc   : > { %v658_v48 = vpack.c.bf16 (!%p114_p2), %v445_v45, %v444_v44  ;;  %v429_v50 = vld [vmem:[%s1076_s1 + $0x48] sm:$0xff] (!%p114_p2)  ;;  %v447_v54 = vld [vmem:[%s1076_s1 + $0xd8] sm:$0xff] (!%p114_p2)  ;;  %v430_v56 = vld [vmem:[%s1076_s1 + $0x50] sm:$0xff] (!%p114_p2) }
   0xd   : > { %s1079_s11 = smov (!%p136_p3, %s135_s11), 5  ;;  %683 = vmatpush3.bf16.msra.mxu1 %v648_v25  ;;  %649 = vmatpush3.bf16.msra.mxu0 %v648_v25  ;;  %v660_v51 = vpack.c.bf16 %v429_v50, %v428_v49  ;;  %v662_v55 = vpack.c.bf16 %v447_v54, %v446_v53  ;;  %v431_v57 = vld [vmem:[%s1076_s1 + $0x58] sm:$0xff]  ;;  %v448_v62 = vld [vmem:[%s1076_s1 + $0xe0] sm:$0xff]  ;;  %v449_v63 = vld [vmem:[%s1076_s1 + $0xe8] sm:$0xff] }
   0xe   : > { %s597_s12 = sshll.u32 %s1079_s11, 3  ;;  %676 = vmatprep.subr.bf16.mxu1 %v650_v31  ;;  %651 = vmatprep.subr.bf16.mxu0 %v650_v31  ;;  %v664_v60 = vpack.c.bf16 %v431_v57, %v430_v56  ;;  %v451_v11 = vld [vmem:[%s1076_s1 + $0xf8] sm:$0xff]  ;;  %v434_v13 = vld [vmem:[%s1076_s1 + $0x70] sm:$0xff] }
   0xf   : > { %s139_s15 = scalar_lea.vmem %s1075_s0, %s597_s12  ;;  %v435_v14 = vld [vmem:[%s1076_s1 + $0x78] sm:$0xff]  ;;  %s145_s4 = scalar_lea.vmem %s1077_s2, %s597_s12 }
  0x10   : > { %v775_v1 = vld [vmem:[%s139_s15 + $0x8] sm:$0xff]  ;;  %v777_v2 = vld [vmem:[%s139_s15] sm:$0xff]  ;;  %v781_v3 = vld [vmem:[%s139_s15 + $0x10] sm:$0xff]  ;;  %v672_v15 = vpack.c.bf16 %v435_v14, %v434_v13 }
  0x11   : > { %157 = vperm.xlu0 %707, %v775_v1   ;;  %154 = vperm.xlu1 %708, %v777_v2   ;;  %v175_v4 = vadd.s32 119, %v775_v1  ;;  %v205_v6 = vadd.s32 123, %v775_v1  ;;  %v174_v7 = vadd.s32 119, %v777_v2  ;;  %v176_v9 = vadd.s32 119, %v781_v3 }
  0x12   : > { %v235_v10 = vadd.s32 134, %v775_v1  ;;  %v204_v18 = vadd.s32 123, %v777_v2  ;;  %v265_v19 = vadd.s32 146, %v775_v1  ;;  %v206_v27 = vadd.s32 123, %v781_v3  ;;  %684 = vmatpush3.bf16.msra.mxu1 %v652_v34  ;;  %653 = vmatpush3.bf16.msra.mxu0 %v652_v34 }
  0x13   : > { %v295_v30 = vadd.s32 155, %v775_v1  ;;  %v234_v38 = vadd.s32 134, %v777_v2  ;;  %v325_v42 = vadd.s32 160, %v775_v1  ;;  %677 = vmatprep.subr.bf16.mxu1 %v654_v39  ;;  %655 = vmatprep.subr.bf16.mxu0 %v654_v39  ;;  %v236_v47 = vadd.s32 134, %v781_v3 }
  0x14   : > { %v355_v52 = vadd.s32 168, %v775_v1  ;;  %v264_v59 = vadd.s32 146, %v777_v2  ;;  %v385_v61 = vadd.s32 170, %v775_v1  ;;  %v433_v1 = vld [vmem:[%s1076_s1 + $0x68] sm:$0xff]  ;;  %v296_v17 = vadd.s32 155, %v781_v3 }
  0x15   : > { %709 = vset.pattern.permute.xlu0 %v734_v5  ;;  %160 = vperm.xlu1 %708, %v781_v3   ;;  %v354_v20 = vadd.s32 168, %v777_v2  ;;  %v356_v21 = vadd.s32 168, %v781_v3  ;;  %v386_v22 = vadd.s32 170, %v781_v3 }
  0x16   : > { %181 = vperm.xlu0 %709, %v175_v4   ;;  %685 = vmatpush3.bf16.msra.mxu1 %v656_v43  ;;  %v666_v4 = vpack.c.bf16 %v449_v63, %v448_v62 }
  0x17   : > { %678 = vmatprep.subr.bf16.mxu1 %v658_v48  ;;  %657 = vmatpush3.bf16.msra.mxu0 %v656_v43 }
  0x18   : > { %659 = vmatprep.subr.bf16.mxu0 %v658_v48 }
  0x19   : > { %710 = vset.pattern.permute.xlu1 %v735_v8 }
  0x1a   : > { %211 = vperm.xlu1 %710, %v205_v6   ;;  %178 = vperm.xlu0 %709, %v174_v7   ;;  %v266_v6 = vadd.s32 146, %v781_v3 }
  0x1b   : > { %686 = vmatpush3.bf16.msra.mxu1 %v660_v51  ;;  %661 = vmatpush3.bf16.msra.mxu0 %v660_v51 }
  0x1c   : > { %679 = vmatprep.subr.bf16.mxu1 %v662_v55  ;;  %663 = vmatprep.subr.bf16.mxu0 %v662_v55 }
  0x1e   : > { %711 = vset.pattern.permute.xlu1 %v734_v5  ;;  %712 = vset.pattern.permute.xlu0 %v736_v16  ;;  %v432_v5 = vld [vmem:[%s1076_s1 + $0x60] sm:$0xff] }
  0x1f   : > { %184 = vperm.xlu1 %711, %v176_v9   ;;  %241 = vperm.xlu0 %712, %v235_v10   ;;  %v668_v7 = vpack.c.bf16 %v433_v1, %v432_v5  ;;  %v384_v9 = vadd.s32 170, %v777_v2  ;;  %v450_v10 = vld [vmem:[%s1076_s1 + $0xf0] sm:$0xff] }
  0x20   : > { %687 = vmatpush3.bf16.msra.mxu1 %v664_v60  ;;  %665 = vmatpush3.bf16.msra.mxu0 %v664_v60  ;;  %v670_v12 = vpack.c.bf16 %v451_v11, %v450_v10 }
  0x21   : > { %680 = vmatprep.subr.bf16.mxu1 %v666_v4  ;;  %667 = vmatprep.subr.bf16.mxu0 %v666_v4 }
  0x23   : > { %713 = vset.pattern.permute.xlu1 %v735_v8  ;;  %714 = vset.pattern.permute.xlu0 %v737_v26  ;;  %v741_v8 = vmov 8  }
  0x24   : > { %208 = vperm.xlu1 %713, %v204_v18   ;;  %271 = vperm.xlu0 %714, %v265_v19   ;;  %v324_v18 = vadd.s32 160, %v777_v2  ;;  %v326_v19 = vadd.s32 160, %v781_v3 }
  0x25   : > { %688 = vmatpush3.bf16.msra.mxu1 %v668_v7  ;;  %669 = vmatpush3.bf16.msra.mxu0 %v668_v7 }
  0x26   : > { %681 = vmatprep.subr.bf16.mxu1 %v670_v12  ;;  %671 = vmatprep.subr.bf16.mxu0 %v670_v12 }
  0x28   : > { %214 = vperm.xlu1 %713, %v206_v27   ;;  %716 = vset.pattern.permute.xlu0 %v738_v35 }
  0x29   : > { %301 = vperm.xlu0 %716, %v295_v30   ;;  %689 = vmatpush3.bf16.msra.mxu1 %v672_v15 }
  0x2a   : > { %673 = vmatpush3.bf16.msra.mxu0 %v672_v15 }
  0x2c   : > { %715 = vset.pattern.permute.xlu1 %v736_v16  ;;  %v294_v16 = vadd.s32 155, %v777_v2  ;;  %v916_v2 = vand.u32 127, %v150_v29 }
  0x2d   : > { %238 = vperm.xlu1 %715, %v234_v38   ;;  %718 = vset.pattern.permute.xlu0 %v739_v46 }
  0x2e   : > { %331 = vperm.xlu0 %718, %v325_v42   ;;  %v921_v32 = vadd.s32 128, %v916_v2 }
  0x31   : > { %244 = vperm.xlu1 %715, %v236_v47  }
  0x32   : > { %720 = vset.pattern.permute.xlu0 %v740_v58 }
  0x33   : > { %361 = vperm.xlu0 %720, %v355_v52  }
  0x35   : > { %717 = vset.pattern.permute.xlu1 %v737_v26 }
  0x36   : > { %268 = vperm.xlu1 %717, %v264_v59  }
  0x37   : > { %722 = vset.pattern.permute.xlu0 %v741_v8 }
  0x38   : > { %391 = vperm.xlu0 %722, %v385_v61  }
  0x3a   : > { %274 = vperm.xlu1 %717, %v266_v6  }
  0x3c   : > { %388 = vperm.xlu0 %722, %v384_v9  }
  0x3e   : > { %719 = vset.pattern.permute.xlu1 %v738_v35 }
  0x3f   : > { %298 = vperm.xlu1 %719, %v294_v16  }
  0x43   : > { %304 = vperm.xlu1 %719, %v296_v17  }
  0x47   : > { %721 = vset.pattern.permute.xlu1 %v739_v46 }
  0x48   : > { %328 = vperm.xlu1 %721, %v324_v18  }
  0x4c   : > { %334 = vperm.xlu1 %721, %v326_v19  }
  0x50   : > { %723 = vset.pattern.permute.xlu1 %v740_v58 }
  0x51   : > { %358 = vperm.xlu1 %723, %v354_v20  }
  0x55   : > { %364 = vperm.xlu1 %723, %v356_v21  }
  0x59   : > { %724 = vset.pattern.permute.xlu1 %v741_v8 }
  0x5a   : > { %394 = vperm.xlu1 %724, %v386_v22  }
  0x90   : > { %v910_v23 = vpop.permute.xlu1 %154  ;;  %v158_v24 = vpop.permute.xlu0 %157 }
  0x91   : > { %vm164_vm0 = vcmp.eq.s32.totalorder %v916_v2, %v158_v24  ;;  %vm165_vm1 = vcmp.eq.s32.totalorder %v921_v32, %v158_v24 }
  0x92   : > { %v170_v34 = vsel %vm164_vm0, 1, %v733_v0  ;;  %v171_v35 = vsel %vm165_vm1, 1, %v733_v0 }
  0x94   : > { %v912_v25 = vpop.permute.xlu1 %160 }
  0x95   : > { %v182_v26 = vpop.permute.xlu0 %181 }
  0x96   : > { %vm188_vm2 = vcmp.eq.s32.totalorder %v916_v2, %v182_v26  ;;  %vm189_vm3 = vcmp.eq.s32.totalorder %v921_v32, %v182_v26 }
  0x97   : > { %v194_v36 = vsel %vm188_vm2, 1, %v733_v0  ;;  %v195_v37 = vsel %vm189_vm3, 1, %v733_v0  ;;  %vm162_vm2 = vcmp.eq.s32.totalorder %v916_v2, %v910_v23  ;;  %vm163_vm3 = vcmp.eq.s32.totalorder %v921_v32, %v910_v23 }
  0x98   : > { %v200_v40 = vadd.s32 %v194_v36, %v170_v34  ;;  %v201_v41 = vadd.s32 %v195_v37, %v171_v35  ;;  %v168_v19 = vsel %vm162_vm2, 1, %v733_v0  ;;  %v169_v20 = vsel %vm163_vm3, 1, %v733_v0 }
  0x99   : > { %v212_v27 = vpop.permute.xlu1 %211  ;;  %v914_v28 = vpop.permute.xlu0 %178 }
  0x9a   : > { %vm218_vm4 = vcmp.eq.s32.totalorder %v916_v2, %v212_v27  ;;  %vm219_vm5 = vcmp.eq.s32.totalorder %v921_v32, %v212_v27 }
  0x9b   : > { %v224_v42 = vsel %vm218_vm4, 1, %v733_v0  ;;  %v225_v43 = vsel %vm219_vm5, 1, %v733_v0  ;;  %vm186_vm4 = vcmp.eq.s32.totalorder %v916_v2, %v914_v28  ;;  %vm187_vm5 = vcmp.eq.s32.totalorder %v921_v32, %v914_v28 }
  0x9c   : > { %v230_v48 = vadd.s32 %v224_v42, %v200_v40  ;;  %v231_v49 = vadd.s32 %v225_v43, %v201_v41  ;;  %v192_v21 = vsel %vm186_vm4, 1, %v733_v0  ;;  %v193_v22 = vsel %vm187_vm5, 1, %v733_v0 }
  0x9e   : > { %v918_v30 = vpop.permute.xlu1 %184  ;;  %v242_v31 = vpop.permute.xlu0 %241 }
  0x9f   : > { %vm248_vm6 = vcmp.eq.s32.totalorder %v916_v2, %v242_v31  ;;  %vm249_vm7 = vcmp.eq.s32.totalorder %v921_v32, %v242_v31  ;;  %v199_v31 = vadd.s32 %v193_v22, %v169_v20 }
  0xa0   : > { %v254_v45 = vsel %vm248_vm6, 1, %v733_v0  ;;  %v255_v46 = vsel %vm249_vm7, 1, %v733_v0  ;;  %vm190_vm6 = vcmp.eq.s32.totalorder %v916_v2, %v918_v30  ;;  %vm191_vm7 = vcmp.eq.s32.totalorder %v921_v32, %v918_v30 }
  0xa1   : > { %v260_v52 = vadd.s32 %v254_v45, %v230_v48  ;;  %v261_v53 = vadd.s32 %v255_v46, %v231_v49  ;;  %v196_v23 = vsel %vm190_vm6, 1, %v733_v0  ;;  %v197_v24 = vsel %vm191_vm7, 1, %v733_v0 }
  0xa2   : > { %v198_v30 = vadd.s32 %v192_v21, %v168_v19 }
  0xa3   : > { %v923_v3 = vpop.permute.xlu1 %208  ;;  %v272_v33 = vpop.permute.xlu0 %271 }
  0xa4   : > { %vm278_vm8 = vcmp.eq.s32.totalorder %v916_v2, %v272_v33  ;;  %vm279_vm9 = vcmp.eq.s32.totalorder %v921_v32, %v272_v33 }
  0xa5   : > { %v284_v50 = vsel %vm278_vm8, 1, %v733_v0  ;;  %v285_v51 = vsel %vm279_vm9, 1, %v733_v0  ;;  %vm166_vm8 = vcmp.eq.s32.totalorder %v916_v2, %v912_v25  ;;  %vm167_vm9 = vcmp.eq.s32.totalorder %v921_v32, %v912_v25 }
  0xa6   : > { %v290_v57 = vadd.s32 %v284_v50, %v260_v52  ;;  %v291_v58 = vadd.s32 %v285_v51, %v261_v53  ;;  %v172_v25 = vsel %vm166_vm8, 1, %v733_v0  ;;  %v173_v27 = vsel %vm167_vm9, 1, %v733_v0 }
  0xa7   : > { %v933_v38 = vpop.permute.xlu1 %214  ;;  %v203_v33 = vadd.s32 %v197_v24, %v173_v27 }
  0xa8   : > { %v302_v39 = vpop.permute.xlu0 %301 }
  0xa9   : > { %vm308_vm10 = vcmp.eq.s32.totalorder %v916_v2, %v302_v39  ;;  %vm309_vm11 = vcmp.eq.s32.totalorder %v921_v32, %v302_v39 }
  0xaa   : > { %v314_v55 = vsel %vm308_vm10, 1, %v733_v0  ;;  %v315_v56 = vsel %vm309_vm11, 1, %v733_v0  ;;  %vm216_vm10 = vcmp.eq.s32.totalorder %v916_v2, %v923_v3  ;;  %vm217_vm11 = vcmp.eq.s32.totalorder %v921_v32, %v923_v3 }
  0xab   : > { %v320_v62 = vadd.s32 %v314_v55, %v290_v57  ;;  %v321_v63 = vadd.s32 %v315_v56, %v291_v58  ;;  %v222_v28 = vsel %vm216_vm10, 1, %v733_v0  ;;  %v223_v29 = vsel %vm217_vm11, 1, %v733_v0 }
  0xac   : > { %v943_v44 = vpop.permute.xlu1 %238  ;;  %v202_v3 = vadd.s32 %v196_v23, %v172_v25  ;;  %v228_v36 = vadd.s32 %v222_v28, %v198_v30  ;;  %v229_v37 = vadd.s32 %v223_v29, %v199_v31 }
  0xad   : > { %v332_v47 = vpop.permute.xlu0 %331 }
  0xae   : > { %vm338_vm12 = vcmp.eq.s32.totalorder %v916_v2, %v332_v47  ;;  %vm339_vm13 = vcmp.eq.s32.totalorder %v921_v32, %v332_v47 }
  0xaf   : > { %v344_v60 = vsel %vm338_vm12, 1, %v733_v0  ;;  %v345_v61 = vsel %vm339_vm13, 1, %v733_v0  ;;  %vm220_vm12 = vcmp.eq.s32.totalorder %v916_v2, %v933_v38  ;;  %vm221_vm13 = vcmp.eq.s32.totalorder %v921_v32, %v933_v38 }
  0xb0   : > { %v953_v54 = vpop.permute.xlu1 %244  ;;  %v350_v6 = vadd.s32 %v344_v60, %v320_v62  ;;  %v351_v7 = vadd.s32 %v345_v61, %v321_v63  ;;  %v226_v34 = vsel %vm220_vm12, 1, %v733_v0  ;;  %v227_v35 = vsel %vm221_vm13, 1, %v733_v0 }
  0xb1   : > { %vm250_vm2 = vcmp.eq.s32.totalorder %v916_v2, %v953_v54  ;;  %vm251_vm3 = vcmp.eq.s32.totalorder %v921_v32, %v953_v54  ;;  %v232_v41 = vadd.s32 %v226_v34, %v202_v3  ;;  %v233_v42 = vadd.s32 %v227_v35, %v203_v33 }
  0xb2   : > { %v362_v59 = vpop.permute.xlu0 %361  ;;  %v256_v47 = vsel %vm250_vm2, 1, %v733_v0  ;;  %v257_v48 = vsel %vm251_vm3, 1, %v733_v0 }
  0xb3   : > { %vm368_vm14 = vcmp.eq.s32.totalorder %v916_v2, %v362_v59  ;;  %vm369_vm15 = vcmp.eq.s32.totalorder %v921_v32, %v362_v59  ;;  %v262_v57 = vadd.s32 %v256_v47, %v232_v41  ;;  %v263_v58 = vadd.s32 %v257_v48, %v233_v42 }
  0xb4   : > { %v374_v4 = vsel %vm368_vm14, 1, %v733_v0  ;;  %v375_v5 = vsel %vm369_vm15, 1, %v733_v0  ;;  %vm246_vm14 = vcmp.eq.s32.totalorder %v916_v2, %v943_v44  ;;  %vm247_vm15 = vcmp.eq.s32.totalorder %v921_v32, %v943_v44 }
  0xb5   : > { %v963_v1 = vpop.permute.xlu1 %268  ;;  %v380_v9 = vadd.s32 %v374_v4, %v350_v6  ;;  %v381_v10 = vadd.s32 %v375_v5, %v351_v7  ;;  %v252_v38 = vsel %vm246_vm14, 1, %v733_v0  ;;  %v253_v39 = vsel %vm247_vm15, 1, %v733_v0 }
  0xb6   : > { %v258_v45 = vadd.s32 %v252_v38, %v228_v36  ;;  %v259_v46 = vadd.s32 %v253_v39, %v229_v37 }
  0xb7   : > { %v392_v8 = vpop.permute.xlu0 %391 }
  0xb8   : > { %vm398_vm0 = vcmp.eq.s32.totalorder %v916_v2, %v392_v8  ;;  %vm399_vm1 = vcmp.eq.s32.totalorder %v921_v32, %v392_v8 }
  0xb9   : > { %v404_v11 = vsel %vm398_vm0, 1, %v733_v0  ;;  %v968_v12 = vpop.permute.xlu1 %274  ;;  %v405_v13 = vsel %vm399_vm1, 1, %v733_v0  ;;  %vm276_vm0 = vcmp.eq.s32.totalorder %v916_v2, %v963_v1  ;;  %vm277_vm1 = vcmp.eq.s32.totalorder %v921_v32, %v963_v1 }
  0xba   : > { %v410_v14 = vadd.s32 %v404_v11, %v380_v9  ;;  %v411_v15 = vadd.s32 %v405_v13, %v381_v10  ;;  %v282_v43 = vsel %vm276_vm0, 1, %v733_v0  ;;  %v283_v44 = vsel %vm277_vm1, 1, %v733_v0 }
  0xbb   : > { %v288_v52 = vadd.s32 %v282_v43, %v258_v45  ;;  %v289_v53 = vadd.s32 %v283_v44, %v259_v46  ;;  %vm280_vm8 = vcmp.eq.s32.totalorder %v916_v2, %v968_v12  ;;  %vm281_vm9 = vcmp.eq.s32.totalorder %v921_v32, %v968_v12  ;;  %v389_v54 = vpop.permute.xlu0 %388 }
  0xbc   : > { %v417_v16 = vcvt.s32.f32 %v411_v15  ;;  %v416_v17 = vcvt.s32.f32 %v410_v14  ;;  %v286_v61 = vsel %vm280_vm8, 1, %v733_v0  ;;  %v287_v62 = vsel %vm281_vm9, 1, %v733_v0 }
  0xbd   : > { %vm396_vm10 = vcmp.eq.s32.totalorder %v916_v2, %v389_v54  ;;  %vm397_vm11 = vcmp.eq.s32.totalorder %v921_v32, %v389_v54  ;;  %v292_v13 = vadd.s32 %v286_v61, %v262_v57  ;;  %v293_v14 = vadd.s32 %v287_v62, %v263_v58 }
  0xbe   : > { %v299_v18 = vpop.permute.xlu1 %298  ;;  %521 = vmatprep.mubr.f32.mxu1 %v417_v16  ;;  %v402_v7 = vsel %vm396_vm10, 1, %v733_v0  ;;  %v403_v8 = vsel %vm397_vm11, 1, %v733_v0 }
  0xbf   : > { %522 = vmatmul.mubr.f32.vlgmr.msra.gmra.mrb[0].mxu1 %v416_v17  ;;  %vm306_vm4 = vcmp.eq.s32.totalorder %v916_v2, %v299_v18  ;;  %vm307_vm5 = vcmp.eq.s32.totalorder %v921_v32, %v299_v18 }
  0xc0   : > { %v312_v49 = vsel %vm306_vm4, 1, %v733_v0  ;;  %v313_v50 = vsel %vm307_vm5, 1, %v733_v0 }
  0xc1   : > { %v318_v59 = vadd.s32 %v312_v49, %v288_v52  ;;  %v319_v60 = vadd.s32 %v313_v50, %v289_v53 }
  0xc2   : > { %v997_v26 = vpop.permute.xlu1 %304 }
  0xc3   : > { %vm310_vm12 = vcmp.eq.s32.totalorder %v916_v2, %v997_v26  ;;  %vm311_vm13 = vcmp.eq.s32.totalorder %v921_v32, %v997_v26 }
  0xc4   : > { %v316_v9 = vsel %vm310_vm12, 1, %v733_v0  ;;  %v317_v10 = vsel %vm311_vm13, 1, %v733_v0 }
  0xc5   : > { %v322_v20 = vadd.s32 %v316_v9, %v292_v13  ;;  %v323_v21 = vadd.s32 %v317_v10, %v293_v14 }
  0xc7   : > { %v329_v40 = vpop.permute.xlu1 %328 }
  0xc8   : > { %vm336_vm6 = vcmp.eq.s32.totalorder %v916_v2, %v329_v40  ;;  %vm337_vm7 = vcmp.eq.s32.totalorder %v921_v32, %v329_v40 }
  0xc9   : > { %v342_v55 = vsel %vm336_vm6, 1, %v733_v0  ;;  %v343_v56 = vsel %vm337_vm7, 1, %v733_v0  ;;  %vm532_vm6 = vcmask 261120  }
  0xca   : > { %v348_v63 = vadd.s32 %v342_v55, %v318_v59  ;;  %v349_v4 = vadd.s32 %v343_v56, %v319_v60 }
  0xcb   : > { %v335_v51 = vpop.permute.xlu1 %334 }
  0xcc   : > { %vm340_vm14 = vcmp.eq.s32.totalorder %v916_v2, %v335_v51  ;;  %vm341_vm15 = vcmp.eq.s32.totalorder %v921_v32, %v335_v51 }
  0xcd   : > { %v346_v15 = vsel %vm340_vm14, 1, %v733_v0  ;;  %v347_v16 = vsel %vm341_vm15, 1, %v733_v0 }
  0xce   : > { %v352_v25 = vadd.s32 %v346_v15, %v322_v20  ;;  %v353_v27 = vadd.s32 %v347_v16, %v323_v21 }
  0xd0   : > { %v359_v5 = vpop.permute.xlu1 %358 }
  0xd1   : > { %vm366_vm0 = vcmp.eq.s32.totalorder %v916_v2, %v359_v5  ;;  %vm367_vm1 = vcmp.eq.s32.totalorder %v921_v32, %v359_v5 }
  0xd2   : > { %v372_v1 = vsel %vm366_vm0, 1, %v733_v0  ;;  %v373_v6 = vsel %vm367_vm1, 1, %v733_v0 }
  0xd3   : > { %v378_v11 = vadd.s32 %v372_v1, %v348_v63  ;;  %v379_v12 = vadd.s32 %v373_v6, %v349_v4 }
  0xd4   : > { %v365_v17 = vpop.permute.xlu1 %364 }
  0xd5   : > { %v408_v18 = vadd.s32 %v402_v7, %v378_v11  ;;  %vm370_vm2 = vcmp.eq.s32.totalorder %v916_v2, %v365_v17  ;;  %vm371_vm3 = vcmp.eq.s32.totalorder %v921_v32, %v365_v17  ;;  %v409_v19 = vadd.s32 %v403_v8, %v379_v12 }
  0xd6   : > { %v376_v23 = vsel %vm370_vm2, 1, %v733_v0  ;;  %v377_v24 = vsel %vm371_vm3, 1, %v733_v0 }
  0xd7   : > { %v414_v22 = vcvt.s32.f32 %v408_v18  ;;  %v415_v26 = vcvt.s32.f32 %v409_v19  ;;  %v382_v29 = vadd.s32 %v376_v23, %v352_v25  ;;  %v383_v30 = vadd.s32 %v377_v24, %v353_v27 }
  0xd9   : > { %v395_v28 = vpop.permute.xlu1 %394  ;;  %516 = vmatprep.mubr.f32.mxu0 %v415_v26 }
  0xda   : > { %vm400_vm4 = vcmp.eq.s32.totalorder %v916_v2, %v395_v28  ;;  %vm401_vm5 = vcmp.eq.s32.totalorder %v921_v32, %v395_v28  ;;  %517 = vmatmul.mubr.f32.vlgmr.msra.gmra.mrb[0].mxu0 %v414_v22 }
  0xdb   : > { %v406_v31 = vsel %vm400_vm4, 1, %v733_v0  ;;  %v407_v3 = vsel %vm401_vm5, 1, %v733_v0 }
  0xdc   : > { %v412_v33 = vadd.s32 %v406_v31, %v382_v29  ;;  %v413_v34 = vadd.s32 %v407_v3, %v383_v30 }
  0xde   : > { %v418_v35 = vcvt.s32.f32 %v412_v33  ;;  %v419_v36 = vcvt.s32.f32 %v413_v34 }
  0xe0   : > { %526 = vmatprep.mubr.f32.mxu1 %v419_v36 }
  0xe1   : > { %527 = vmatmul.mubr.f32.gmra.mrb[2].mxu1 %v418_v35 }
 0x192   : > { %v636_v37 = vpop.f32.mrb[0].mxu1 }
 0x193   : > { %v637_v2 = vpop.f32.mrb[1].mxu1 }
 0x194   : > { %v638_v32 = vadd.f32 %v637_v2, %v636_v37 }
 0x196   : > { %534 = vst.msk [vmem:[%s145_s4 + $0x8] sm:$0xff] %vm532_vm6, %v638_v32 }
 0x1ad   : > { %v633_v38 = vpop.f32.mrb[0].mxu0 }
 0x1ae   : > { %v634_v39 = vpop.f32.mrb[1].mxu0 }
 0x1af   : > { %v635_v40 = vadd.f32 %v634_v39, %v633_v38 }
 0x1b1   : > { %533 = vst.msk [vmem:[%s145_s4] sm:$0xff] %vm532_vm6, %v635_v40 }
 0x1b4   : > { %v639_v0 = vpop.f32.mrb[2].mxu1 }
 0x1b5   : > { %v640_v41 = vpop.f32.mrb[3].mxu1 }
 0x1b6   : > { %v641_v42 = vadd.f32 %v640_v41, %v639_v0 }
 0x1b8   : > { %535 = vst.msk [vmem:[%s145_s4 + $0x10] sm:$0xff] %vm532_vm6, %v641_v42 }
 0x1b9 PF: > { %s12_s9 = sadd.s32 1, %s731_s9  }
 0x1ba   : > { %p9_p4 = scmp.ge.s32.totalorder %s12_s9, 4  }
 0x1bc   :  { %11 = sbr.rel (!%p9_p4) target bundleno = 1 (0x1), region = 58 }

</bundles_post_ra>
